<compile_context>
chip_gen: v5e
topology: v5e:2x2
jax: 0.10.0
libtpu: 0.0.40
codegen_flags: <defaults>
</compile_context>

<pallas_src>
import jax
import jax.numpy as jnp
from jax import lax
from jax.experimental import pallas as pl
from jax.experimental.pallas import tpu as pltpu

BN_EPS = 1e-5   # nn.BatchNorm1d default (the module's self.eps=1e-9 is unused by bn)
LANE = 128      # TPU lane width


def dice_kernel(x_ref, alpha_ref, o_ref):
    x = x_ref[...].astype(jnp.float32)           # (N, TF)
    alpha = alpha_ref[...].astype(jnp.float32)   # (1, TF)

    # BatchNorm1d (training mode, affine=False): per-feature batch mean / biased var.
    inv_n = 1.0 / x.shape[0]
    mean = jnp.sum(x, axis=0, keepdims=True) * inv_n          # (1, TF)
    d = x - mean                                              # reused for var + norm
    var = jnp.sum(d * d, axis=0, keepdims=True) * inv_n       # biased variance
    x_normed = d * lax.rsqrt(var + BN_EPS)

    x_p = jax.nn.sigmoid(x_normed)

    # alpha*(1-x_p)*x + x_p*x  ==  x * (alpha + x_p * (1 - alpha))
    out = x * (alpha + x_p * (1.0 - alpha))
    o_ref[...] = out.astype(o_ref.dtype)


def dice_pallas(x, alpha, *, max_tile_f=512, vmem_budget_bytes=24 << 20):
    """x: (N, F), alpha: (F,) -> (N, F). Batch stats computed over N (training-mode BN)."""
    n, f = x.shape

    # Pad feature dim to a multiple of 128 so blocks / stores are lane-dense.
    f_pad = ((f + LANE - 1) // LANE) * LANE
    if f_pad != f:
        x = jnp.pad(x, ((0, 0), (0, f_pad - f)))
        alpha = jnp.pad(alpha, ((0, f_pad - f),))
    alpha2d = alpha.reshape(1, f_pad)

    # Pick the widest 128-multiple feature tile that divides f_pad, is <= max_tile_f,
    # and fits a conservative VMEM budget (2 in-bufs + 2 out-bufs + f32 temporaries ~= 6x).
    candidates = [t for t in range(LANE, min(f_pad, max_tile_f) + 1, LANE) if f_pad % t == 0]
    fitting = [t for t in candidates if 6 * n * t * 4 <= vmem_budget_bytes]
    tf = max(fitting) if fitting else LANE
    grid = (f_pad // tf,)

    # TODO(synk): if N is ever too large for an (N, TF) block, add a second "arbitrary"
    # grid axis over N with (1, TF) sum/sumsq accumulators (two-pass normalize).
    out = pl.pallas_call(
        dice_kernel,
        out_shape=jax.ShapeDtypeStruct((n, f_pad), x.dtype),
        grid=grid,
        in_specs=[
            pl.BlockSpec((n, tf), lambda i: (0, i)),
            pl.BlockSpec((1, tf), lambda i: (0, i)),
        ],
        out_specs=pl.BlockSpec((n, tf), lambda i: (0, i)),
        compiler_params=pltpu.CompilerParams(
            dimension_semantics=("parallel",),
        ),
    )(x, alpha2d)

    return out[:, :f] if f_pad != f else out


def dice_ref(x, alpha):
    xf = x.astype(jnp.float32)
    mean = jnp.mean(xf, axis=0, keepdims=True)
    var = jnp.mean((xf - mean) ** 2, axis=0, keepdims=True)
    x_normed = (xf - mean) / jnp.sqrt(var + BN_EPS)
    x_p = jax.nn.sigmoid(x_normed)
    return (alpha.reshape(1, -1) * (1.0 - x_p) * xf + x_p * xf).astype(x.dtype)


if __name__ == "__main__":
    key = jax.random.PRNGKey(0)
    batch, num_features = 16, 32

    kx, ka = jax.random.split(key)
    x = jax.random.normal(kx, (batch, num_features), dtype=jnp.float32)

    # PyTorch initializes alpha = zeros(num_features). Use small non-zero values so the
    # alpha branch is exercised; set to zeros for exact parity with a fresh module.
    alpha = 0.25 * jax.random.normal(ka, (num_features,), dtype=jnp.float32)

    out = jax.block_until_ready(dice_pallas(x, alpha))

    ref = dice_ref(x, alpha)
    assert out.shape == (batch, num_features)
    assert jnp.allclose(out, ref, atol=1e-5, rtol=1e-5), "mismatch vs reference"

    print("KERNEL_OK")
</pallas_src>

<mosaic_0001>
module attributes {stable_mosaic.version = 11 : i64} {
  func.func @dice_kernel(%arg0: i32, %arg1: memref<16x128xf32, #tpu.memory_space<vmem>>, %arg2: memref<1x128xf32, #tpu.memory_space<vmem>>, %arg3: memref<16x128xf32, #tpu.memory_space<vmem>>) attributes {dimension_semantics = [#tpu.dimension_semantics<parallel>], iteration_bounds = array<i64: 1>, scalar_prefetch = 0 : i64, scratch_operands = 0 : i64, tpu.core_type = #tpu.core_type<tc>, window_params = [{transform_indices = @transform_0, window_bounds = array<i64: 16, 128>}, {transform_indices = @transform_1, window_bounds = array<i64: 1, 128>}, {transform_indices = @transform_2, window_bounds = array<i64: 16, 128>}]} {
    %c0 = arith.constant 0 : index
    %c0_0 = arith.constant 0 : index
    %0 = vector.load %arg1[%c0, %c0_0] : memref<16x128xf32, #tpu.memory_space<vmem>>, vector<16x128xf32>
    %c0_1 = arith.constant 0 : index
    %c0_2 = arith.constant 0 : index
    %1 = vector.load %arg2[%c0_1, %c0_2] : memref<1x128xf32, #tpu.memory_space<vmem>>, vector<1x128xf32>
    %cst = arith.constant dense<0.000000e+00> : vector<128xf32>
    %2 = vector.multi_reduction <add>, %0, %cst [0] : vector<16x128xf32> to vector<128xf32>
    %3 = vector.shape_cast %2 : vector<128xf32> to vector<1x128xf32>
    %cst_3 = arith.constant 6.250000e-02 : f32
    %4 = vector.broadcast %cst_3 : f32 to vector<1x128xf32>
    %5 = arith.mulf %3, %4 : vector<1x128xf32>
    %6 = vector.broadcast %5 : vector<1x128xf32> to vector<16x128xf32>
    %7 = arith.subf %0, %6 : vector<16x128xf32>
    %8 = arith.mulf %7, %7 : vector<16x128xf32>
    %cst_4 = arith.constant dense<0.000000e+00> : vector<128xf32>
    %9 = vector.multi_reduction <add>, %8, %cst_4 [0] : vector<16x128xf32> to vector<128xf32>
    %10 = vector.shape_cast %9 : vector<128xf32> to vector<1x128xf32>
    %cst_5 = arith.constant 6.250000e-02 : f32
    %11 = vector.broadcast %cst_5 : f32 to vector<1x128xf32>
    %12 = arith.mulf %10, %11 : vector<1x128xf32>
    %cst_6 = arith.constant 9.99999974E-6 : f32
    %13 = vector.broadcast %cst_6 : f32 to vector<1x128xf32>
    %14 = arith.addf %12, %13 : vector<1x128xf32>
    %15 = math.rsqrt %14 : vector<1x128xf32>
    %16 = vector.broadcast %15 : vector<1x128xf32> to vector<16x128xf32>
    %17 = arith.mulf %7, %16 : vector<16x128xf32>
    %18 = arith.negf %17 : vector<16x128xf32>
    %19 = math.exp %18 : vector<16x128xf32>
    %cst_7 = arith.constant 1.000000e+00 : f32
    %20 = vector.broadcast %cst_7 : f32 to vector<16x128xf32>
    %21 = arith.addf %20, %19 : vector<16x128xf32>
    %22 = arith.divf %20, %21 : vector<16x128xf32>
    %cst_8 = arith.constant 1.000000e+00 : f32
    %23 = vector.broadcast %cst_8 : f32 to vector<1x128xf32>
    %24 = arith.subf %23, %1 : vector<1x128xf32>
    %25 = vector.broadcast %24 : vector<1x128xf32> to vector<16x128xf32>
    %26 = arith.mulf %22, %25 : vector<16x128xf32>
    %27 = vector.broadcast %1 : vector<1x128xf32> to vector<16x128xf32>
    %28 = arith.addf %27, %26 : vector<16x128xf32>
    %29 = arith.mulf %0, %28 : vector<16x128xf32>
    %c0_9 = arith.constant 0 : index
    %c0_10 = arith.constant 0 : index
    %30 = vector.load %arg3[%c0_9, %c0_10] : memref<16x128xf32, #tpu.memory_space<vmem>>, vector<16x128xf32>
    tpu.vector_store %arg3[%c0_9, %c0_10], %29 {strides = array<i32>} : memref<16x128xf32, #tpu.memory_space<vmem>>, vector<16x128xf32>,
    return
  }
  func.func @transform_0(%arg0: i32) -> (i32, i32) {
    %c0_i32 = arith.constant 0 : i32
    %c0_i32_0 = arith.constant 0 : i32
    return %c0_i32, %arg0 : i32, i32
  }
  func.func @transform_1(%arg0: i32) -> (i32, i32) {
    %c0_i32 = arith.constant 0 : i32
    %c0_i32_0 = arith.constant 0 : i32
    return %c0_i32, %arg0 : i32, i32
  }
  func.func @transform_2(%arg0: i32) -> (i32, i32) {
    %c0_i32 = arith.constant 0 : i32
    %c0_i32_0 = arith.constant 0 : i32
    return %c0_i32, %arg0 : i32, i32
  }
}

</mosaic_0001>

<bundles_post_ra>
// kernel: tpu_custom_call.1
= control target key start
LH: loop header
LB: loop body
LE: loop exit
PB: predicated region body
PF: predicated region fallthrough
CT: control target
= control target key end

     0   :  { %7 = vsyncpa [#allocation3], 0  ;;  %s292_s0 = inlined_call_operand.hbm [shape: f32[16,128], index: 0, kind: input, shape index: {}]   ;;  %s293_s1 = inlined_call_operand.hbm [shape: f32[1,128], index: 1, kind: input, shape index: {}]   ;;  %s294_s2 = inlined_call_operand.hbm [shape: f32[16,128], index: 2, kind: output, shape index: {}]  }
   0x1   :  { %8 = vsyncpa [#allocation6], 0 }
   0x2   :  { %9 = vsyncpa [#allocation4], 0  ;;  %s14_s11 = sshll.u32 %s292_s0, 4  ;;  %s247_s12 = smov [#allocation2]   ;;  %s15_s11 = int_to_ptr.hbm [resolvable:$true] %s14_s11 }
   0x3   :  { %s16_s13 = sshll.u32 %s247_s12, 4  ;;  %s28_s16 = sshll.u32 %s293_s1, 4  ;;  %s17_s13 = int_to_ptr.vmem [resolvable:$true] %s16_s13  ;;  %s29_s16 = int_to_ptr.hbm [resolvable:$true] %s28_s16 }
   0x4   :  { %s248_s17 = smov 128   ;;  %s249_s18 = smov 8  }
   0x5   :  { %22 = dma.hbm_to_vmem [thread:$0]  %s15_s11, 256, %s17_s13, [#allocation3], %s248_s17, %s248_s17, %s249_s18  }
   0x6   :  { %s250_s19 = smov [#allocation5]  }
   0x7   :  { %s30_s20 = sshll.u32 %s250_s19, 4  ;;  %s31_s20 = int_to_ptr.vmem [resolvable:$true] %s30_s20 }
   0x8   :  { %33 = dma.hbm_to_vmem [thread:$0]  %s29_s16, 16, %s31_s20, [#allocation6]  }
   0x9   :  { %241 = dma.done.wait [#allocation3], 256  }
   0xa   :  { %242 = vsyncadd [#allocation3], 4294967040 }
   0xb   :  { %243 = dma.done.wait [#allocation6], 16  }
   0xc   :  { %244 = vsyncadd [#allocation6], 4294967280  ;;  %v276_v0 = vld [vmem:[#allocation2] sm:$0xff]  ;;  %v278_v1 = vld [vmem:[#allocation2 + $0x8] sm:$0xff]  ;;  %s251_s0 = smov [#allocation7]   ;;  %s137_s23 = sshll.u32 %s294_s2, 4  ;;  %s138_s23 = int_to_ptr.hbm [resolvable:$true] %s137_s23 }
   0xd   :  { %v45_v2 = vadd.f32 %v278_v1, %v276_v0  ;;  %v44_v38 = vld [vmem:[#allocation5] sm:$0x1]  ;;  %s135_s1 = sshll.u32 %s251_s0, 4  ;;  %s136_s1 = int_to_ptr.vmem [resolvable:$true] %s135_s1 }
   0xe   :  { %v116_v43 = vsub.f32 1.0, %v44_v38  ;;  %v158_v58 = vld [vmem:[#allocation5] ss:$0 sm:$0xff] }
   0xf   :  { %v46_v3 = vrot.slane %v45_v2, 4 }
  0x10   :  { %v118_v54 = vperm.slane %v116_v43, 0 }
  0x11   :  { %v47_v4 = vadd.f32 %v46_v3, %v45_v2 }
  0x13   :  { %v48_v5 = vrot.slane %v47_v4, 2 }
  0x15   :  { %v49_v6 = vadd.f32 %v48_v5, %v47_v4 }
  0x17   :  { %v50_v7 = vrot.slane %v49_v6, 1 }
  0x19   :  { %v51_v8 = vadd.f32 %v50_v7, %v49_v6 }
  0x1b   :  { %v52_v9 = vmul.f32 0.0625, %v51_v8 }
  0x1d   :  { %v53_v10 = vsub.f32 %v276_v0, %v52_v9  ;;  %v54_v11 = vsub.f32 %v278_v1, %v52_v9 }
  0x1f   :  { %v55_v12 = vmul.f32 %v53_v10, %v53_v10  ;;  %v56_v13 = vmul.f32 %v54_v11, %v54_v11 }
  0x21   :  { %v57_v14 = vadd.f32 %v56_v13, %v55_v12 }
  0x23   :  { %v58_v15 = vrot.slane %v57_v14, 4 }
  0x25   :  { %v59_v16 = vadd.f32 %v58_v15, %v57_v14 }
  0x27   :  { %v60_v17 = vrot.slane %v59_v16, 2 }
  0x29   :  { %v61_v18 = vadd.f32 %v60_v17, %v59_v16 }
  0x2b   :  { %v62_v19 = vrot.slane %v61_v18, 1 }
  0x2d   :  { %v63_v20 = vadd.f32 %v62_v19, %v61_v18 }
  0x2f   :  { %v64_v21 = vmul.f32 0.0625, %v63_v20 }
  0x31   :  { %v65_v22 = vadd.f32 1e-05, %v64_v21 }
  0x33   :  { %159 = vrsqrt.f32 %v65_v22  ;;  %vm72_vm0 = vweird.f32 %v65_v22 }
  0x39   :  { %v160_v23 = vpop.eup %159 }
  0x3a   :  { %v67_v24 = vmul.f32 %v160_v23, %v65_v22  ;;  %vm73_vm1 = vweird.f32 %v160_v23 }
  0x3b   :  { %vm74_vm2 = vmor %vm72_vm0, %vm73_vm1 }
  0x3c   :  { %v68_v25 = vmul.f32 %v160_v23, %v67_v24 }
  0x3e   :  { %v69_v26 = vmul.f32 0.5, %v68_v25 }
  0x40   :  { %v70_v27 = vsub.f32 1.5, %v69_v26 }
  0x42   :  { %v71_v28 = vmul.f32 %v160_v23, %v70_v27 }
  0x44   :  { %v75_v29 = vsel %vm74_vm2, %v160_v23, %v71_v28 }
  0x45   :  { %v76_v30 = vmul.f32 %v75_v29, %v53_v10  ;;  %v77_v31 = vmul.f32 %v75_v29, %v54_v11 }
  0x47   :  { %v151_v32 = vmul.f32 -1.442695, %v76_v30  ;;  %v152_v33 = vmul.f32 -1.442695, %v77_v31 }
  0x49   :  { %161 = vpow2.f32 %v151_v32 }
  0x4a   :  { %163 = vpow2.f32 %v152_v33 }
  0x4f   :  { %v162_v34 = vpop.eup %161 }
  0x50   :  { %v164_v35 = vpop.eup %163  ;;  %v84_v36 = vadd.f32 1.0, %v162_v34 }
  0x51   :  { %v85_v37 = vadd.f32 1.0, %v164_v35 }
  0x52   :  { %165 = vrcp.f32 %v84_v36  ;;  %vm91_vm3 = vweird.f32 %v84_v36  ;;  %v97_v42 = vand.u32 2147483648, %v84_v36  ;;  %v95_v46 = vand.u32 2147483647, %v84_v36 }
  0x53   :  { %167 = vrcp.f32 %v85_v37  ;;  %v112_v47 = vand.u32 2147483648, %v85_v37  ;;  %vm106_vm5 = vweird.f32 %v85_v37  ;;  %v110_v49 = vand.u32 2147483647, %v85_v37 }
  0x54   :  { %v98_v51 = vor.u32 1.1754944e-38, %v97_v42  ;;  %vm96_vm8 = vcmp.eq.f32.partialorder %v95_v46, 8.507059e+37 }
  0x55   :  { %v113_v55 = vor.u32 1.1754944e-38, %v112_v47  ;;  %vm111_vm10 = vcmp.eq.f32.partialorder %v110_v49, 8.507059e+37 }
  0x58   :  { %v166_v39 = vpop.eup %165 }
  0x59   :  { %v168_v40 = vpop.eup %167  ;;  %v87_v41 = vmul.f32 %v166_v39, %v84_v36  ;;  %vm92_vm4 = vweird.f32 %v166_v39 }
  0x5a   :  { %v102_v44 = vmul.f32 %v168_v40, %v85_v37  ;;  %vm107_vm6 = vweird.f32 %v168_v40  ;;  %vm93_vm7 = vmor %vm91_vm3, %vm92_vm4 }
  0x5b   :  { %v88_v45 = vsub.f32 1.0, %v87_v41  ;;  %vm108_vm9 = vmor %vm106_vm5, %vm107_vm6 }
  0x5c   :  { %v103_v48 = vsub.f32 1.0, %v102_v44 }
  0x5d   :  { %v89_v50 = vmul.f32 %v166_v39, %v88_v45 }
  0x5e   :  { %v104_v52 = vmul.f32 %v168_v40, %v103_v48 }
  0x5f   :  { %v90_v53 = vadd.f32 %v166_v39, %v89_v50 }
  0x60   :  { %v105_v56 = vadd.f32 %v168_v40, %v104_v52 }
  0x61   :  { %v94_v57 = vsel %vm93_vm7, %v166_v39, %v90_v53 }
  0x62   :  { %v99_v59 = vsel %vm96_vm8, %v98_v51, %v94_v57  ;;  %v109_v60 = vsel %vm108_vm9, %v168_v40, %v105_v56 }
  0x63   :  { %v120_v61 = vmul.f32 %v118_v54, %v99_v59  ;;  %v114_v62 = vsel %vm111_vm10, %v113_v55, %v109_v60 }
  0x64   :  { %v121_v63 = vmul.f32 %v118_v54, %v114_v62 }
  0x65   :  { %v125_v2 = vadd.f32 %v158_v58, %v120_v61 }
  0x66   :  { %v126_v3 = vadd.f32 %v158_v58, %v121_v63 }
  0x67   :  { %v127_v4 = vmul.f32 %v125_v2, %v276_v0 }
  0x68   :  { %v128_v5 = vmul.f32 %v126_v3, %v278_v1 }
  0x69   :  { %129 = vst [vmem:[#allocation7] sm:$0xff] %v127_v4 }
  0x6a   :  { %130 = vst [vmem:[#allocation7 + $0x8] sm:$0xff] %v128_v5 }
  0x6b   :  { %143 = dma.vmem_to_hbm [thread:$0]  %s136_s1, 256, %s138_s23, [#allocation4], %s248_s17, %s248_s17, %s249_s18  }
  0x6c   :  { %245 = dma.done.wait [#allocation4], 256  }
  0x6d   :  { %246 = vsyncadd [#allocation4], 4294967040 }
  0x6e   :  { %148 = vsyncpa [#allocation3], 1 }
  0x6f   :  { %149 = vsyncpa [#allocation6], 1 }
  0x70   :  { %150 = vsyncpa [#allocation4], 1 }

</bundles_post_ra>
